<compile_context>
chip_gen: v7x
topology: tpu7x:2x2x1
jax: 0.10.0
libtpu: 0.0.40
codegen_flags: <defaults>
</compile_context>

<pallas_src>
import math
import jax
import jax.numpy as jnp
from jax.experimental import pallas as pl
from jax.experimental.pallas import tpu as pltpu

C_IN = 56
C_OUT = 64


def _fused_conv1x1_kernel(x_ref, w_ref, b_ref, x2_ref, oth_ref, o_ref):
    # x_ref:   (B, Cin,  TS)  zero-padded images; channels on sublanes, a tile of
    #                         the flattened padded spatial dim (Hp*Wp) on lanes
    # w_ref:   (Cout, Cin)    resident (constant index_map)
    # b_ref:   (Cout, 1)      resident
    # x2_ref:  (B, Cout, TS)
    # oth_ref: (B, Cout, TS)
    # o_ref:   (B, Cout, TS)
    n_img = x_ref.shape[0]
    for b in range(n_img):  # static unroll; B is 1 or 2
        conv = jnp.dot(w_ref[...], x_ref[b], preferred_element_type=jnp.float32)
        o_ref[b] = ((conv + b_ref[...]) * x2_ref[b] + oth_ref[b]).astype(o_ref.dtype)


def model_forward(x1_nchw, x2_nchw, other_nchw, weight, bias):
    """x1: (N, 56, H, W); x2, other: (N, 64, H+2, W+2). Returns (N, 64, H+2, W+2)."""
    N, Cin, H, W = x1_nchw.shape
    Cout = weight.shape[0]
    Hp, Wp = H + 2, W + 2
    S = Hp * Wp

    # conv padding=1 with a 1x1 kernel == zero-pad the input's spatial dims; at the
    # padded border the conv output is exactly `bias`.  This pad is the only glue op
    # and only touches the smallest stream (x1).  Everything else stays NCHW.
    xp = jnp.pad(x1_nchw, ((0, 0), (0, 0), (1, 1), (1, 1)))

    # Free (contiguous) reshapes: flattened padded spatial on the lane axis.
    xp = xp.reshape(N, Cin, S)
    x2 = x2_nchw.reshape(N, Cout, S)
    oth = other_nchw.reshape(N, Cout, S)

    w2 = weight.reshape(Cout, Cin)   # 1x1 kernel -> plain (Cout, Cin) matrix
    b2 = bias.reshape(Cout, 1)

    # --- tiling heuristics ---------------------------------------------------
    # Batch 2 images per step when possible (amortise per-step overhead); split
    # the lane axis only when there are too few image blocks to pipeline AND the
    # image is large enough to be worth splitting (keeps tiles 128-multiple wide).
    b_img = 2 if (N % 2 == 0 and N >= 4) else 1
    n_img_blocks = N // b_img
    if n_img_blocks >= 4 or S <= 2048:
        ts = S                      # whole image on lanes (full-dim block is legal)
    else:
        ts = 1280                   # multiple of 128 -> lane-dense stores
    n_sp = pl.cdiv(S, ts)
    grid = (n_img_blocks, n_sp)

    out = pl.pallas_call(
        _fused_conv1x1_kernel,
        out_shape=jax.ShapeDtypeStruct((N, Cout, S), jnp.float32),
        grid_spec=pltpu.PrefetchScalarGridSpec(
            num_scalar_prefetch=0,
            grid=grid,
            in_specs=[
                pl.BlockSpec((b_img, Cin, ts), lambda i, j: (i, 0, j)),
                pl.BlockSpec((Cout, Cin), lambda i, j: (0, 0)),
                pl.BlockSpec((Cout, 1), lambda i, j: (0, 0)),
                pl.BlockSpec((b_img, Cout, ts), lambda i, j: (i, 0, j)),
                pl.BlockSpec((b_img, Cout, ts), lambda i, j: (i, 0, j)),
            ],
            out_specs=pl.BlockSpec((b_img, Cout, ts), lambda i, j: (i, 0, j)),
        ),
        compiler_params=pltpu.CompilerParams(
            dimension_semantics=("parallel", "parallel")),
    )(xp, w2, b2, x2, oth)

    # Free reshape back to NCHW (contiguous).
    return out.reshape(N, Cout, Hp, Wp)


def init_params(key):
    # Deterministic init mimicking PyTorch Conv2d defaults (kaiming-uniform bounds).
    kw, kb = jax.random.split(key)
    fan_in = C_IN * 1 * 1
    bound = 1.0 / math.sqrt(fan_in)
    weight = jax.random.uniform(kw, (C_OUT, C_IN, 1, 1), jnp.float32, -bound, bound)
    bias = jax.random.uniform(kb, (C_OUT,), jnp.float32, -bound, bound)
    return weight, bias


if __name__ == "__main__":
    key = jax.random.PRNGKey(0)
    k_w, k_x1, k_x2, k_other = jax.random.split(key, 4)

    N, H, W = 2, 16, 16
    weight, bias = init_params(k_w)
    x1 = jax.random.normal(k_x1, (N, C_IN, H, W), jnp.float32)
    x2 = jax.random.normal(k_x2, (N, C_OUT, H + 2, W + 2), jnp.float32)
    other = jax.random.normal(k_other, (N, C_OUT, H + 2, W + 2), jnp.float32)

    out = jax.jit(model_forward)(x1, x2, other, weight, bias)
    out = jax.block_until_ready(out)

    # Reference check with plain JAX conv.
    ref_conv = jax.lax.conv_general_dilated(
        x1, weight, window_strides=(1, 1), padding=((1, 1), (1, 1)),
        dimension_numbers=("NCHW", "OIHW", "NCHW"))
    ref = ref_conv + bias.reshape(1, C_OUT, 1, 1)
    ref = ref * x2 + other
    assert out.shape == (N, C_OUT, H + 2, W + 2)
    assert jnp.allclose(out, ref, atol=1e-4, rtol=1e-4)

    print("KERNEL_OK")
</pallas_src>

<mosaic_0001>
module attributes {stable_mosaic.version = 11 : i64} {
  func.func @_fused_conv1x1_kernel(%arg0: i32, %arg1: i32, %arg2: memref<1x56x324xf32, #tpu.memory_space<vmem>>, %arg3: memref<64x56xf32, #tpu.memory_space<vmem>>, %arg4: memref<64x1xf32, #tpu.memory_space<vmem>>, %arg5: memref<1x64x324xf32, #tpu.memory_space<vmem>>, %arg6: memref<1x64x324xf32, #tpu.memory_space<vmem>>, %arg7: memref<1x64x324xf32, #tpu.memory_space<vmem>>) attributes {dimension_semantics = [#tpu.dimension_semantics<parallel>, #tpu.dimension_semantics<parallel>], iteration_bounds = array<i64: 2, 1>, scalar_prefetch = 0 : i64, scratch_operands = 0 : i64, tpu.core_type = #tpu.core_type<tc>, window_params = [{transform_indices = @transform_0, window_bounds = array<i64: 1, 56, 324>}, {pipeline_mode = #tpu.pipeline_mode<synchronous>, transform_indices = @transform_1, window_bounds = array<i64: 64, 56>}, {pipeline_mode = #tpu.pipeline_mode<synchronous>, transform_indices = @transform_2, window_bounds = array<i64: 64, 1>}, {transform_indices = @transform_3, window_bounds = array<i64: 1, 64, 324>}, {transform_indices = @transform_4, window_bounds = array<i64: 1, 64, 324>}, {transform_indices = @transform_5, window_bounds = array<i64: 1, 64, 324>}]} {
    %c0 = arith.constant 0 : index
    %c0_0 = arith.constant 0 : index
    %0 = vector.load %arg3[%c0, %c0_0] : memref<64x56xf32, #tpu.memory_space<vmem>>, vector<64x56xf32>
    %c0_1 = arith.constant 0 : index
    %c0_2 = arith.constant 0 : index
    %c0_3 = arith.constant 0 : index
    %1 = vector.load %arg2[%c0_1, %c0_2, %c0_3] : memref<1x56x324xf32, #tpu.memory_space<vmem>>, vector<1x56x324xf32>
    %2 = vector.shape_cast %1 : vector<1x56x324xf32> to vector<56x324xf32>
    %cst = arith.constant dense<0.000000e+00> : vector<64x324xf32>
    %3 = tpu.matmul %0, %2, %cst {dimension_numbers = #tpu.dot_dimension_numbers<[1], [0], [0], [1], [0, 0, 1, 1], [], []>} : vector<64x56xf32>, vector<56x324xf32>, vector<64x324xf32> -> vector<64x324xf32>
    %c0_4 = arith.constant 0 : index
    %c0_5 = arith.constant 0 : index
    %4 = vector.load %arg4[%c0_4, %c0_5] : memref<64x1xf32, #tpu.memory_space<vmem>>, vector<64x1xf32>
    %5 = vector.broadcast %4 : vector<64x1xf32> to vector<64x324xf32>
    %6 = arith.addf %3, %5 : vector<64x324xf32>
    %c0_6 = arith.constant 0 : index
    %c0_7 = arith.constant 0 : index
    %c0_8 = arith.constant 0 : index
    %7 = vector.load %arg5[%c0_6, %c0_7, %c0_8] : memref<1x64x324xf32, #tpu.memory_space<vmem>>, vector<1x64x324xf32>
    %8 = vector.shape_cast %7 : vector<1x64x324xf32> to vector<64x324xf32>
    %9 = arith.mulf %6, %8 : vector<64x324xf32>
    %c0_9 = arith.constant 0 : index
    %c0_10 = arith.constant 0 : index
    %c0_11 = arith.constant 0 : index
    %10 = vector.load %arg6[%c0_9, %c0_10, %c0_11] : memref<1x64x324xf32, #tpu.memory_space<vmem>>, vector<1x64x324xf32>
    %11 = vector.shape_cast %10 : vector<1x64x324xf32> to vector<64x324xf32>
    %12 = arith.addf %9, %11 : vector<64x324xf32>
    %c0_12 = arith.constant 0 : index
    %c0_13 = arith.constant 0 : index
    %c0_14 = arith.constant 0 : index
    %13 = vector.load %arg7[%c0_12, %c0_13, %c0_14] : memref<1x64x324xf32, #tpu.memory_space<vmem>>, vector<1x64x324xf32>
    %14 = vector.shape_cast %13 : vector<1x64x324xf32> to vector<64x324xf32>
    %15 = vector.shape_cast %12 : vector<64x324xf32> to vector<1x64x324xf32>
    tpu.vector_store %arg7[%c0_12, %c0_13, %c0_14], %15 {strides = array<i32>} : memref<1x64x324xf32, #tpu.memory_space<vmem>>, vector<1x64x324xf32>,
    return
  }
  func.func @transform_0(%arg0: i32, %arg1: i32) -> (i32, i32, i32) {
    %c0_i32 = arith.constant 0 : i32
    %c0_i32_0 = arith.constant 0 : i32
    return %arg0, %c0_i32, %arg1 : i32, i32, i32
  }
  func.func @transform_1(%arg0: i32, %arg1: i32) -> (i32, i32) {
    %c0_i32 = arith.constant 0 : i32
    %c0_i32_0 = arith.constant 0 : i32
    %c0_i32_1 = arith.constant 0 : i32
    return %c0_i32, %c0_i32_0 : i32, i32
  }
  func.func @transform_2(%arg0: i32, %arg1: i32) -> (i32, i32) {
    %c0_i32 = arith.constant 0 : i32
    %c0_i32_0 = arith.constant 0 : i32
    %c0_i32_1 = arith.constant 0 : i32
    return %c0_i32, %c0_i32_0 : i32, i32
  }
  func.func @transform_3(%arg0: i32, %arg1: i32) -> (i32, i32, i32) {
    %c0_i32 = arith.constant 0 : i32
    %c0_i32_0 = arith.constant 0 : i32
    return %arg0, %c0_i32, %arg1 : i32, i32, i32
  }
  func.func @transform_4(%arg0: i32, %arg1: i32) -> (i32, i32, i32) {
    %c0_i32 = arith.constant 0 : i32
    %c0_i32_0 = arith.constant 0 : i32
    return %arg0, %c0_i32, %arg1 : i32, i32, i32
  }
  func.func @transform_5(%arg0: i32, %arg1: i32) -> (i32, i32, i32) {
    %c0_i32 = arith.constant 0 : i32
    %c0_i32_0 = arith.constant 0 : i32
    return %arg0, %c0_i32, %arg1 : i32, i32, i32
  }
}

</mosaic_0001>

<bundles_post_ra>
// kernel: model_forward.1
= control target key start
LH: loop header
LB: loop body
LE: loop exit
PB: predicated region body
PF: predicated region fallthrough
CT: control target
= control target key end

     0   :  { %s1078_s18 = smov 0   ;;  %s1080_s19 = smov 0   ;;  %s1336_s0 = inlined_call_operand.vmem [shape: f32[2,56,324], index: 0, kind: input, shape index: {}]   ;;  %s1337_s1 = inlined_call_operand.vmem [shape: f32[64,56], index: 1, kind: input, shape index: {}]   ;;  %s1338_s2 = inlined_call_operand.vmem [shape: f32[64,1], index: 2, kind: input, shape index: {}]   ;;  %s1339_s3 = inlined_call_operand.vmem [shape: f32[2,64,324], index: 3, kind: input, shape index: {}]   ;;  %s1340_s4 = inlined_call_operand.vmem [shape: f32[2,64,324], index: 4, kind: input, shape index: {}]   ;;  %s1341_s5 = inlined_call_operand.vmem [shape: f32[2,64,324], index: 5, kind: output, shape index: {}]  }
   0x1   :  { %s1082_s20 = smov 0  }
   0x2 LB: > { %s27_s21 = sadd.s32 1, %s1040_s19  ;;  %p904_p0 = scmp.ge.s32.totalorder %s1044_s20, 1  ;;  %s1044_s20 = sphi %s1082_s20, %s15_s20   ;;  %s1040_s19 = sphi %s1080_s19, %s1343_s19   ;;  %s1036_s18 = sphi %s1078_s18, %s1342_s18  }
   0x3   : > { %p29_p1 = scmp.ge.s32.totalorder %s27_s21, 2  ;;  %p242_p2 = scmp.lt.s32.totalorder %s1044_s20, 3 }
   0x5   : > { %s1345_s21 = smov (%p29_p1, %s27_s21), 0  ;;  %p243_p3 = pnand %p904_p0, %p242_p2 }
   0x6   : > { %p297_p4 = scmp.lt.s32.totalorder (!%p243_p3), %s1036_s18, 1  ;;  %v1099_v0 = vld [vmem:[%s1337_s1] sm:$0xff] (!%p243_p3)  ;;  %vm413_vm0 = vcmask (!%p243_p3), 457728   ;;  %v1046_v1 = vmov (!%p243_p3), 0.0   ;;  %v1047_v2 = vmov (!%p243_p3), 0   ;;  %v367_v4 = vld [vmem:[%s1338_s2 + $0x10] sm:$0xff] (!%p243_p3) }
   0x7   : > { %246 = sbr.rel (%p243_p3) target bundleno = 283 (0x11b), region = 40  ;;  %502 = vmatprep.mubr.f32.mxu0 (!%p243_p3), %v1046_v1  ;;  %956 = vmatprep.mubr.msk.f32.mxu1 (!%p243_p3), %vm413_vm0, %v1099_v0  ;;  %v365_v3 = vld [vmem:[%s1338_s2] sm:$0xff] (!%p243_p3)  ;;  %v366_v5 = vld [vmem:[%s1338_s2 + $0x8] sm:$0xff] (!%p243_p3)  ;;  %v368_v6 = vld [vmem:[%s1338_s2 + $0x18] sm:$0xff] (!%p243_p3)  ;;  %vm754_vm1 = vcmask (!%p243_p3), 556032  }
   0x8   : > { %1020 = vset.pattern.permute.xlu0 (!%p243_p3), %v1047_v2  ;;  %1021 = vset.pattern.permute.xlu1 (!%p243_p3), %v1047_v2  ;;  %v369_v7 = vld [vmem:[%s1338_s2 + $0x20] sm:$0xff] (!%p243_p3)  ;;  %v370_v15 = vld [vmem:[%s1338_s2 + $0x28] sm:$0xff] (!%p243_p3)  ;;  %v371_v28 = vld [vmem:[%s1338_s2 + $0x30] sm:$0xff] (!%p243_p3) }
   0x9   : > { %375 = vperm.xlu0 (!%p243_p3), %1020, %v365_v3   ;;  %385 = vperm.xlu1 (!%p243_p3), %1021, %v367_v4   ;;  %v372_v36 = vld [vmem:[%s1338_s2 + $0x38] sm:$0xff] (!%p243_p3)  ;;  %v337_v41 = vld [vmem:[%s1337_s1 + $0x8] sm:$0xff] (!%p243_p3)  ;;  %v338_v42 = vld [vmem:[%s1337_s1 + $0x10] sm:$0xff] (!%p243_p3) }
   0xa   : > { %v339_v43 = vld [vmem:[%s1337_s1 + $0x18] sm:$0xff] (!%p243_p3)  ;;  %v340_v44 = vld [vmem:[%s1337_s1 + $0x20] sm:$0xff] (!%p243_p3)  ;;  %v341_v45 = vld [vmem:[%s1337_s1 + $0x28] sm:$0xff] (!%p243_p3) }
   0xb   : > { %v342_v46 = vld [vmem:[%s1337_s1 + $0x30] sm:$0xff] (!%p243_p3)  ;;  %v343_v47 = vld [vmem:[%s1337_s1 + $0x38] sm:$0xff] (!%p243_p3) }
   0xd   : > { %380 = vperm.xlu0 (!%p243_p3), %1020, %v366_v5   ;;  %390 = vperm.xlu1 (!%p243_p3), %1021, %v368_v6  }
   0xe   : > { %s1347_s18 = smov (!%p297_p4, %s1036_s18), 1 }
   0xf   : > { %s992_s28 = smul.u32 168, %s1347_s18 }
  0x10   : > { %s993_s12 = smul.u32 192, %s1347_s18 }
  0x11   : > { %s1122_s10 = scalar_lea.vmem %s1336_s0, %s992_s28  ;;  %395 = vperm.xlu0 %1020, %v369_v7   ;;  %400 = vperm.xlu1 %1021, %v370_v15  }
  0x12   : > { %v345_v8 = vld [vmem:[%s1122_s10 + $0x8] sm:$0xff]  ;;  %v348_v9 = vld [vmem:[%s1122_s10 + $0x20] sm:$0xff]  ;;  %v347_v12 = vld [vmem:[%s1122_s10 + $0x18] sm:$0xff]  ;;  %s1207_s15 = scalar_lea.vmem %s1339_s3, %s993_s12  ;;  %s1212_s22 = scalar_lea.vmem %s1340_s4, %s993_s12 }
  0x13   : > { %v344_v10 = vld [vmem:[%s1122_s10] sm:$0xff]  ;;  %v968_v11 = vpack.c.bf16 %v348_v9, %v345_v8  ;;  %v351_v13 = vld [vmem:[%s1122_s10 + $0x38] sm:$0xff]  ;;  %v354_v14 = vld [vmem:[%s1122_s10 + $0x50] sm:$0xff]  ;;  %s1225_s24 = scalar_lea.vmem %s1341_s5, %s993_s12 }
  0x14   : > { %v970_v16 = vpack.c.bf16 %v347_v12, %v344_v10  ;;  %v972_v17 = vpack.c.bf16 %v354_v14, %v351_v13  ;;  %v346_v18 = vld [vmem:[%s1122_s10 + $0x10] sm:$0xff]  ;;  %v349_v19 = vld [vmem:[%s1122_s10 + $0x28] sm:$0xff]  ;;  %v360_v24 = vld [vmem:[%s1122_s10 + $0x80] sm:$0xff] }
  0x15   : > { %v350_v20 = vld [vmem:[%s1122_s10 + $0x30] sm:$0xff]  ;;  %969 = vmatprep.subr.bf16.mxu0 %v968_v11  ;;  %v980_v21 = vpack.c.bf16 %v349_v19, %v346_v18  ;;  %v353_v22 = vld [vmem:[%s1122_s10 + $0x48] sm:$0xff]  ;;  %v352_v26 = vld [vmem:[%s1122_s10 + $0x40] sm:$0xff]  ;;  %405 = vperm.xlu0 %1020, %v371_v28  }
  0x16   : > { %v357_v23 = vld [vmem:[%s1122_s10 + $0x68] sm:$0xff]  ;;  %971 = vmatpush1.bf16.msra.mxu0 %v970_v16  ;;  %v974_v25 = vpack.c.bf16 %v353_v22, %v350_v20  ;;  %v355_v27 = vld [vmem:[%s1122_s10 + $0x58] sm:$0xff]  ;;  %v356_v31 = vld [vmem:[%s1122_s10 + $0x60] sm:$0xff]  ;;  %410 = vperm.xlu1 %1021, %v372_v36  }
  0x17   : > { %973 = vmatprep.subr.bf16.mxu0 %v972_v17  ;;  %981 = vmatprep.subr.bf16.mxu1 %v980_v21  ;;  %v976_v29 = vpack.c.bf16 %v360_v24, %v357_v23  ;;  %v984_v30 = vpack.c.bf16 %v355_v27, %v352_v26  ;;  %v359_v32 = vld [vmem:[%s1122_s10 + $0x78] sm:$0xff]  ;;  %v358_v33 = vld [vmem:[%s1122_s10 + $0x70] sm:$0xff]  ;;  %v361_v34 = vld [vmem:[%s1122_s10 + $0x88] sm:$0xff] }
  0x18   : > { %983 = vmatpush3.bf16.msra.mxu1 %v980_v21  ;;  %v988_v35 = vpack.c.bf16 %v361_v34, %v358_v33  ;;  %v978_v37 = vpack.c.bf16 %v359_v32, %v356_v31  ;;  %v363_v38 = vld [vmem:[%s1122_s10 + $0x98] sm:$0xff]  ;;  %v364_v39 = vld [vmem:[%s1122_s10 + $0xa0] sm:$0xff]  ;;  %v362_v40 = vld [vmem:[%s1122_s10 + $0x90] sm:$0xff] }
  0x19   : > { %985 = vmatprep.subr.bf16.mxu1 %v984_v30  ;;  %v656_v51 = vld [vmem:[%s1207_s15] sm:$0xff]  ;;  %v657_v55 = vld [vmem:[%s1207_s15 + $0x8] sm:$0xff]  ;;  %v659_v4 = vld [vmem:[%s1207_s15 + $0x18] sm:$0xff] }
  0x1a   : > { %975 = vmatpush1.bf16.msra.mxu0 %v974_v25  ;;  %v704_v56 = vld [vmem:[%s1212_s22] sm:$0xff]  ;;  %v661_v60 = vld [vmem:[%s1207_s15 + $0x28] sm:$0xff]  ;;  %v706_v12 = vld [vmem:[%s1212_s22 + $0x10] sm:$0xff] }
  0x1b   : > { %977 = vmatprep.subr.bf16.mxu0 %v976_v29  ;;  %v705_v62 = vld [vmem:[%s1212_s22 + $0x8] sm:$0xff]  ;;  %v660_v10 = vld [vmem:[%s1207_s15 + $0x20] sm:$0xff]  ;;  %v707_v14 = vld [vmem:[%s1212_s22 + $0x18] sm:$0xff] }
  0x1c   : > { %987 = vmatpush3.bf16.msra.mxu1 %v984_v30  ;;  %v709_v5 = vld [vmem:[%s1212_s22 + $0x28] sm:$0xff]  ;;  %v667_v18 = vld [vmem:[%s1207_s15 + $0x58] sm:$0xff]  ;;  %v708_v21 = vld [vmem:[%s1212_s22 + $0x20] sm:$0xff] }
  0x1d   : > { %989 = vmatprep.subr.bf16.mxu1 %v988_v35  ;;  %v664_v26 = vld [vmem:[%s1207_s15 + $0x40] sm:$0xff]  ;;  %v662_v29 = vld [vmem:[%s1207_s15 + $0x30] sm:$0xff]  ;;  %v715_v31 = vld [vmem:[%s1212_s22 + $0x58] sm:$0xff] }
  0x1e   : > { %979 = vmatpush1.bf16.msra.mxu0 %v978_v37  ;;  %v663_v36 = vld [vmem:[%s1207_s15 + $0x38] sm:$0xff] }
  0x1f   : > { %450 = vmatprep.subr.mxu0 %v363_v38  ;;  %v712_v38 = vld [vmem:[%s1212_s22 + $0x40] sm:$0xff] }
  0x20   : > { %991 = vmatpush3.bf16.msra.mxu1 %v988_v35 }
  0x21   : > { %954 = vmatprep.subr.mxu1 %v364_v39 }
  0x22   : > { %451 = vmatpush1.msra.mxu0 %v362_v40  ;;  %v710_v40 = vld [vmem:[%s1212_s22 + $0x30] sm:$0xff] }
  0x23   : > { %909 = vmatmul.mubr.msk.f32.vlgmr.msra.gmra.mrb[0].mxu0 %vm413_vm0, %v1099_v0 }
  0x24   : > { %508 = vmatprep.mubr.f32.mxu0 %v1046_v1  ;;  %955 = vmatpush3.msra.mxu1 %v364_v39 }
  0x25   : > { %957 = vmatmul.mubr.msk.f32.vlgmr.msra.gmra.mrb[0].mxu1 %vm413_vm0, %v337_v41 }
  0x26   : > { %959 = vmatprep.mubr.msk.f32.mxu1 %vm413_vm0, %v338_v42 }
  0x27   : > { %910 = vmatmul.mubr.msk.f32.gmra.mrb[2].mxu0 %vm413_vm0, %v337_v41 }
  0x28   : > { %514 = vmatprep.mubr.f32.mxu0 %v1046_v1 }
  0x29   : > { %960 = vmatmul.mubr.msk.f32.gmra.mrb[2].mxu1 %vm413_vm0, %v339_v43 }
  0x2a   : > { %962 = vmatprep.mubr.msk.f32.mxu1 %vm413_vm0, %v340_v44 }
  0x2b   : > { %911 = vmatmul.mubr.msk.f32.gmra.mrb[4].mxu0 %vm413_vm0, %v338_v42 }
  0x2c   : > { %520 = vmatprep.mubr.f32.mxu0 %v1046_v1 }
  0x2d   : > { %963 = vmatmul.mubr.msk.f32.gmra.mrb[4].mxu1 %vm413_vm0, %v341_v45 }
  0x2e   : > { %965 = vmatprep.mubr.msk.f32.mxu1 %vm413_vm0, %v342_v46 }
  0x2f   : > { %912 = vmatmul.mubr.msk.f32.gmra.mrb[6].mxu0 %vm413_vm0, %v339_v43 }
  0x30   : > { %526 = vmatprep.mubr.f32.mxu0 %v1046_v1 }
  0x31   : > { %966 = vmatmul.mubr.msk.f32.gmra.mrb[6].mxu1 %vm413_vm0, %v343_v47 }
  0x33   : > { %913 = vmatmul.mubr.msk.f32.gmra.mrb[8].mxu0 %vm413_vm0, %v340_v44  ;;  %v673_v44 = vld [vmem:[%s1207_s15 + $0x88] sm:$0xff] }
  0x34   : > { %532 = vmatprep.mubr.f32.mxu0 %v1046_v1 }
  0x37   : > { %914 = vmatmul.mubr.msk.f32.gmra.mrb[10].mxu0 %vm413_vm0, %v341_v45 }
  0x38   : > { %538 = vmatprep.mubr.f32.mxu0 %v1046_v1 }
  0x3b   : > { %915 = vmatmul.mubr.msk.f32.gmra.mrb[12].mxu0 %vm413_vm0, %v342_v46  ;;  %v711_v46 = vld [vmem:[%s1212_s22 + $0x38] sm:$0xff] }
  0x3c   : > { %544 = vmatprep.mubr.f32.mxu0 %v1046_v1  ;;  %v658_v1 = vld [vmem:[%s1207_s15 + $0x10] sm:$0xff] }
  0x3f   : > { %916 = vmatmul.mubr.msk.f32.gmra.mrb[14].mxu0 %vm413_vm0, %v343_v47 }
  0x88   : > { %v1202_v48 = vpop.permute.xlu1 %385  ;;  %v376_v49 = vpop.permute.xlu0 %375 }
  0x8c   : > { %v1215_v52 = vpop.permute.xlu1 %390  ;;  %v381_v58 = vpop.permute.xlu0 %380 }
  0x90   : > { %v1233_v19 = vpop.permute.xlu1 %400  ;;  %v1238_v24 = vpop.permute.xlu0 %395 }
  0xf6   : > { %v504_v50 = vpop.f32.mrb[0].mxu0 }
  0xf7   : > { %v505_v53 = vadd.f32 %v504_v50, %v376_v49  ;;  %v506_v54 = vpop.f32.mrb[1].mxu0 }
  0xf8   : > { %v507_v57 = vadd.f32 %v506_v54, %v376_v49  ;;  %v958_v59 = vpop.f32.mrb[0].mxu1  ;;  %v665_v54 = vld [vmem:[%s1207_s15 + $0x48] sm:$0xff] }
  0xf9   : > { %v680_v61 = vmul.f32 %v656_v51, %v505_v53  ;;  %v623_v63 = vadd.f32 %v958_v59, %v381_v58  ;;  %v617_v0 = vpop.f32.mrb[1].mxu1  ;;  %v670_v51 = vld [vmem:[%s1207_s15 + $0x70] sm:$0xff] }
  0xfa   : > { %v681_v2 = vmul.f32 %v657_v55, %v507_v57  ;;  %v510_v3 = vpop.f32.mrb[2].mxu0  ;;  %v618_v6 = vadd.f32 %v617_v0, %v376_v49  ;;  %v718_v0 = vld [vmem:[%s1212_s22 + $0x70] sm:$0xff] }
  0xfb   : > { %v728_v7 = vadd.f32 %v704_v56, %v680_v61  ;;  %v511_v8 = vadd.f32 %v510_v3, %v381_v58  ;;  %v512_v9 = vpop.f32.mrb[3].mxu0  ;;  %v685_v11 = vmul.f32 %v661_v60, %v623_v63  ;;  %v721_v56 = vld [vmem:[%s1212_s22 + $0x88] sm:$0xff] }
  0xfc   : > { %v729_v13 = vadd.f32 %v705_v62, %v681_v2  ;;  %v513_v15 = vadd.f32 %v512_v9, %v381_v58  ;;  %v682_v16 = vmul.f32 %v658_v1, %v618_v6  ;;  %v961_v17 = vpop.f32.mrb[2].mxu1  ;;  %v1263_v58 = vpop.permute.xlu1 %410  ;;  %v666_v62 = vld [vmem:[%s1207_s15 + $0x50] sm:$0xff]  ;;  %v713_v3 = vld [vmem:[%s1212_s22 + $0x48] sm:$0xff] }
  0xfd   : > { %752 = vst [vmem:[%s1225_s24] sm:$0xff] %v728_v7  ;;  %v683_v20 = vmul.f32 %v659_v4, %v511_v8  ;;  %v733_v22 = vadd.f32 %v709_v5, %v685_v11  ;;  %v633_v23 = vadd.f32 %v961_v17, %v1215_v52  ;;  %v627_v25 = vpop.f32.mrb[3].mxu1  ;;  %v1270_v1 = vpop.permute.xlu0 %405  ;;  %v679_v7 = vld [vmem:[%s1207_s15 + $0xb8] sm:$0xff]  ;;  %v714_v9 = vld [vmem:[%s1212_s22 + $0x50] sm:$0xff] }
  0xfe   : > { %753 = vst [vmem:[%s1225_s24 + $0x8] sm:$0xff] %v729_v13  ;;  %v684_v27 = vmul.f32 %v660_v10, %v513_v15  ;;  %v516_v28 = vpop.f32.mrb[4].mxu0  ;;  %v730_v30 = vadd.f32 %v706_v12, %v682_v16  ;;  %v628_v32 = vadd.f32 %v627_v25, %v1202_v48  ;;  %v676_v13 = vld [vmem:[%s1207_s15 + $0xa0] sm:$0xff]  ;;  %v727_v17 = vld [vmem:[%s1212_s22 + $0xb8] sm:$0xff]  ;;  %v669_v25 = vld [vmem:[%s1207_s15 + $0x68] sm:$0xff] }
  0xff   : > { %v731_v33 = vadd.f32 %v707_v14, %v683_v20  ;;  %v517_v34 = vadd.f32 %v516_v28, %v1202_v48  ;;  %v518_v35 = vpop.f32.mrb[5].mxu0  ;;  %758 = vst.msk [vmem:[%s1225_s24 + $0x28] sm:$0xff] %vm754_vm1, %v733_v22  ;;  %v691_v37 = vmul.f32 %v667_v18, %v633_v23  ;;  %v668_v16 = vld [vmem:[%s1207_s15 + $0x60] sm:$0xff] }
 0x100   : > { %v732_v39 = vadd.f32 %v708_v21, %v684_v27  ;;  %v519_v41 = vadd.f32 %v518_v35, %v1202_v48  ;;  %755 = vst.msk [vmem:[%s1225_s24 + $0x10] sm:$0xff] %vm754_vm1, %v730_v30  ;;  %v688_v42 = vmul.f32 %v664_v26, %v628_v32  ;;  %v964_v43 = vpop.f32.mrb[4].mxu1  ;;  %v724_v26 = vld [vmem:[%s1212_s22 + $0xa0] sm:$0xff] }
 0x101   : > { %756 = vst [vmem:[%s1225_s24 + $0x18] sm:$0xff] %v731_v33  ;;  %v686_v45 = vmul.f32 %v662_v29, %v517_v34  ;;  %v739_v47 = vadd.f32 %v715_v31, %v691_v37  ;;  %v643_v49 = vadd.f32 %v964_v43, %v1233_v19  ;;  %v637_v50 = vpop.f32.mrb[5].mxu1  ;;  %v716_v28 = vld [vmem:[%s1212_s22 + $0x60] sm:$0xff]  ;;  %v717_v33 = vld [vmem:[%s1212_s22 + $0x68] sm:$0xff]  ;;  %v671_v37 = vld [vmem:[%s1207_s15 + $0x78] sm:$0xff] }
 0x102   : > { %757 = vst [vmem:[%s1225_s24 + $0x20] sm:$0xff] %v732_v39  ;;  %v687_v53 = vmul.f32 %v663_v36, %v519_v41  ;;  %v522_v48 = vpop.f32.mrb[6].mxu0  ;;  %v736_v55 = vadd.f32 %v712_v38, %v688_v42  ;;  %v638_v57 = vadd.f32 %v637_v50, %v1238_v24  ;;  %v719_v42 = vld [vmem:[%s1212_s22 + $0x78] sm:$0xff] }
 0x103   : > { %v734_v59 = vadd.f32 %v710_v40, %v686_v45  ;;  %v523_v60 = vadd.f32 %v522_v48, %v1215_v52  ;;  %764 = vst.msk [vmem:[%s1225_s24 + $0x58] sm:$0xff] %vm754_vm1, %v739_v47  ;;  %v524_v61 = vpop.f32.mrb[7].mxu0  ;;  %v697_v63 = vmul.f32 %v673_v44, %v643_v49  ;;  %v672_v40 = vld [vmem:[%s1207_s15 + $0x80] sm:$0xff]  ;;  %v674_v49 = vld [vmem:[%s1207_s15 + $0x90] sm:$0xff]  ;;  %v675_v48 = vld [vmem:[%s1207_s15 + $0x98] sm:$0xff] }
 0x104   : > { %v735_v2 = vadd.f32 %v711_v46, %v687_v53  ;;  %v525_v4 = vadd.f32 %v524_v61, %v1215_v52  ;;  %761 = vst.msk [vmem:[%s1225_s24 + $0x40] sm:$0xff] %vm754_vm1, %v736_v55  ;;  %v694_v5 = vmul.f32 %v670_v51, %v638_v57  ;;  %v967_v6 = vpop.f32.mrb[6].mxu1  ;;  %v720_v45 = vld [vmem:[%s1212_s22 + $0x80] sm:$0xff]  ;;  %v722_v55 = vld [vmem:[%s1212_s22 + $0x90] sm:$0xff]  ;;  %v723_v57 = vld [vmem:[%s1212_s22 + $0x98] sm:$0xff] }
 0x105   : > { %759 = vst [vmem:[%s1225_s24 + $0x30] sm:$0xff] %v734_v59  ;;  %v689_v8 = vmul.f32 %v665_v54, %v523_v60  ;;  %v745_v10 = vadd.f32 %v721_v56, %v697_v63  ;;  %v653_v11 = vadd.f32 %v967_v6, %v1263_v58  ;;  %v647_v12 = vpop.f32.mrb[7].mxu1  ;;  %v677_v61 = vld [vmem:[%s1207_s15 + $0xa8] sm:$0xff]  ;;  %v726_v6 = vld [vmem:[%s1212_s22 + $0xb0] sm:$0xff] }
 0x106   : > { %760 = vst [vmem:[%s1225_s24 + $0x38] sm:$0xff] %v735_v2  ;;  %v690_v52 = vmul.f32 %v666_v62, %v525_v4  ;;  %v742_v14 = vadd.f32 %v718_v0, %v694_v5  ;;  %v528_v15 = vpop.f32.mrb[8].mxu0  ;;  %v648_v18 = vadd.f32 %v647_v12, %v1270_v1  ;;  %v678_v2 = vld [vmem:[%s1207_s15 + $0xb0] sm:$0xff]  ;;  %v725_v4 = vld [vmem:[%s1212_s22 + $0xa8] sm:$0xff] }
 0x107   : > { %v737_v20 = vadd.f32 %v713_v3, %v689_v8  ;;  %770 = vst.msk [vmem:[%s1225_s24 + $0x88] sm:$0xff] %vm754_vm1, %v745_v10  ;;  %v529_v21 = vadd.f32 %v528_v15, %v1238_v24  ;;  %v703_v22 = vmul.f32 %v679_v7, %v653_v11  ;;  %v530_v23 = vpop.f32.mrb[9].mxu0 }
 0x108   : > { %v738_v27 = vadd.f32 %v714_v9, %v690_v52  ;;  %767 = vst.msk [vmem:[%s1225_s24 + $0x70] sm:$0xff] %vm754_vm1, %v742_v14  ;;  %v531_v29 = vadd.f32 %v530_v23, %v1238_v24  ;;  %v700_v30 = vmul.f32 %v676_v13, %v648_v18 }
 0x109   : > { %762 = vst [vmem:[%s1225_s24 + $0x48] sm:$0xff] %v737_v20  ;;  %v692_v31 = vmul.f32 %v668_v16, %v529_v21  ;;  %v751_v32 = vadd.f32 %v727_v17, %v703_v22 }
 0x10a   : > { %763 = vst [vmem:[%s1225_s24 + $0x50] sm:$0xff] %v738_v27  ;;  %v693_v34 = vmul.f32 %v669_v25, %v531_v29  ;;  %v748_v35 = vadd.f32 %v724_v26, %v700_v30  ;;  %v534_v36 = vpop.f32.mrb[10].mxu0 }
 0x10b   : > { %v740_v38 = vadd.f32 %v716_v28, %v692_v31  ;;  %776 = vst.msk [vmem:[%s1225_s24 + $0xb8] sm:$0xff] %vm754_vm1, %v751_v32  ;;  %v535_v24 = vadd.f32 %v534_v36, %v1233_v19  ;;  %v536_v39 = vpop.f32.mrb[11].mxu0 }
 0x10c   : > { %v741_v41 = vadd.f32 %v717_v33, %v693_v34  ;;  %773 = vst.msk [vmem:[%s1225_s24 + $0xa0] sm:$0xff] %vm754_vm1, %v748_v35  ;;  %v537_v43 = vadd.f32 %v536_v39, %v1233_v19 }
 0x10d   : > { %765 = vst [vmem:[%s1225_s24 + $0x60] sm:$0xff] %v740_v38  ;;  %v695_v44 = vmul.f32 %v671_v37, %v535_v24 }
 0x10e   : > { %766 = vst [vmem:[%s1225_s24 + $0x68] sm:$0xff] %v741_v41  ;;  %v696_v46 = vmul.f32 %v672_v40, %v537_v43  ;;  %v540_v47 = vpop.f32.mrb[12].mxu0 }
 0x10f   : > { %v743_v50 = vadd.f32 %v719_v42, %v695_v44  ;;  %v541_v51 = vadd.f32 %v540_v47, %v1270_v1  ;;  %v542_v53 = vpop.f32.mrb[13].mxu0 }
 0x110   : > { %v744_v54 = vadd.f32 %v720_v45, %v696_v46  ;;  %v543_v19 = vadd.f32 %v542_v53, %v1270_v1 }
 0x111   : > { %768 = vst [vmem:[%s1225_s24 + $0x78] sm:$0xff] %v743_v50  ;;  %v698_v56 = vmul.f32 %v674_v49, %v541_v51 }
 0x112   : > { %769 = vst [vmem:[%s1225_s24 + $0x80] sm:$0xff] %v744_v54  ;;  %v699_v59 = vmul.f32 %v675_v48, %v543_v19  ;;  %v546_v60 = vpop.f32.mrb[14].mxu0 }
 0x113   : > { %v746_v62 = vadd.f32 %v722_v55, %v698_v56  ;;  %v547_v63 = vadd.f32 %v546_v60, %v1263_v58  ;;  %v548_v0 = vpop.f32.mrb[15].mxu0 }
 0x114   : > { %v747_v3 = vadd.f32 %v723_v57, %v699_v59  ;;  %v549_v1 = vadd.f32 %v548_v0, %v1263_v58 }
 0x115   : > { %771 = vst [vmem:[%s1225_s24 + $0x90] sm:$0xff] %v746_v62  ;;  %v701_v5 = vmul.f32 %v677_v61, %v547_v63 }
 0x116   : > { %772 = vst [vmem:[%s1225_s24 + $0x98] sm:$0xff] %v747_v3  ;;  %v702_v7 = vmul.f32 %v678_v2, %v549_v1 }
 0x117   : > { %v749_v8 = vadd.f32 %v725_v4, %v701_v5 }
 0x118   : > { %v750_v9 = vadd.f32 %v726_v6, %v702_v7 }
 0x119   : > { %774 = vst [vmem:[%s1225_s24 + $0xa8] sm:$0xff] %v749_v8 }
 0x11a   : > { %775 = vst [vmem:[%s1225_s24 + $0xb0] sm:$0xff] %v750_v9 }
 0x11b PF: > { %s15_s20 = sadd.s32 1, %s1044_s20   ;;  %s1342_s18 = smov %s1040_s19 }
 0x11c   : > { %p12_p5 = scmp.ge.s32.totalorder %s15_s20, 4   ;;  %s1343_s19 = smov %s1345_s21 }
 0x11e   :  { %14 = sbr.rel (!%p12_p5) target bundleno = 2 (0x2), region = 76 }

</bundles_post_ra>
